<compile_context>
chip_gen: v7x
topology: tpu7x:2x2x1
jax: 0.10.0
libtpu: 0.0.40
codegen_flags: <defaults>
</compile_context>

<pallas_src>
import jax
import jax.numpy as jnp
from jax.experimental import pallas as pl
from jax.experimental.pallas import tpu as pltpu


# ----------------------------- Pallas kernel --------------------------------


def _lstm_decoder_kernel(wpt_ref, const_ref, wih_wpt_ref, wih_const_ref,
                         whh_ref, b_ref, wpos_ref, bpos_ref, out_ref,
                         h_all_scr):
    """Single-program LSTM decoder.

    wpt_ref       : (Tm1*B_pad, wpt_feat_dim)  time-major, batch-padded wpt feats
    const_ref     : (B_pad, pcd_dim + z_dim)   time-invariant [pn_feat, z_all]
    wih_wpt_ref   : (wpt_feat_dim, 4H)         W_ih[:, :wpt_feat_dim]^T
    wih_const_ref : (pcd_dim + z_dim, 4H)      W_ih[:, wpt_feat_dim:]^T
    whh_ref       : (H, 4H)                    W_hh^T
    b_ref         : (1, 4H)                    b_ih + b_hh
    wpos_ref      : (H, wpt_dim)               pos_decoder.weight^T
    bpos_ref      : (1, wpt_dim)               pos_decoder.bias
    out_ref       : (Tm1*B_pad, wpt_dim)       decoded waypoints (time-major)
    h_all_scr     : (Tm1*B_pad, H) VMEM        per-step hidden states
    """
    b_pad = const_ref.shape[0]
    hidden = whh_ref.shape[0]
    num_steps = wpt_ref.shape[0] // b_pad

    # ---- hoisted, non-recurrent work: two batched MXU calls -----------------
    # Per-step wpt contribution for ALL steps at once.
    wpt_gates = jnp.dot(wpt_ref[...], wih_wpt_ref[...],
                        preferred_element_type=jnp.float32)      # (Tm1*B_pad, 4H)
    # Time-invariant contribution (+ fused bias), computed once.
    const_gates = (jnp.dot(const_ref[...], wih_const_ref[...],
                           preferred_element_type=jnp.float32)
                   + b_ref[...])                                 # (B_pad, 4H)

    whh = whh_ref[...]

    h = jnp.zeros((b_pad, hidden), jnp.float32)
    c = jnp.zeros((b_pad, hidden), jnp.float32)

    # ---- fully-unrolled recurrence (static, small trip count) ---------------
    # Only the (B_pad, H) x (H, 4H) matmul + gate nonlinearities are serial;
    # the small VPU adds co-issue with MXU work.
    for t in range(num_steps):
        gates = (wpt_gates[t * b_pad:(t + 1) * b_pad, :]
                 + const_gates
                 + jnp.dot(h, whh, preferred_element_type=jnp.float32))
        # PyTorch gate order: i, f, g, o
        i_g = jax.nn.sigmoid(gates[:, 0 * hidden:1 * hidden])
        f_g = jax.nn.sigmoid(gates[:, 1 * hidden:2 * hidden])
        g_g = jnp.tanh(gates[:, 2 * hidden:3 * hidden])
        o_g = jax.nn.sigmoid(gates[:, 3 * hidden:4 * hidden])
        c = f_g * c + i_g * g_g
        h = o_g * jnp.tanh(c)
        # Static, sublane-tile-aligned store (b_pad is a multiple of 8).
        h_all_scr[pl.ds(t * b_pad, b_pad), :] = h

    # ---- pos_decoder applied once over all steps; single output store -------
    out_ref[...] = (jnp.dot(h_all_scr[...], wpos_ref[...],
                            preferred_element_type=jnp.float32)
                    + bpos_ref[...])


# ------------------------------ wrapper --------------------------------------


@jax.jit
def lstm_decoder_forward(pn_feat, wpt_feats, z_all, params):
    """Semantics of LSTMDecoder.forward (batch_first LSTM, num_layers=1).

    pn_feat   : (B, pcd_feat_dim)
    wpt_feats : (B, num_steps-1, wpt_feat_dim)
    z_all     : (B, z_feat_dim)
    returns   : (B, num_steps-1, wpt_dim)
    """
    B, Tm1, wpt_feat_dim = wpt_feats.shape
    w_ih, w_hh, b_ih, b_hh, w_pos, b_pos = (
        params["w_ih"], params["w_hh"], params["b_ih"], params["b_hh"],
        params["w_pos"], params["b_pos"],
    )
    H = w_hh.shape[1]
    wpt_dim = w_pos.shape[0]

    # Pad the batch (sublane) dim to a multiple of 8; padded rows are dropped
    # after the kernel.
    B_pad = max(8, ((B + 7) // 8) * 8)

    # Time-major, batch-padded, flattened per-step wpt features: (Tm1*B_pad, F).
    wpt_tm = jnp.transpose(wpt_feats, (1, 0, 2)).astype(jnp.float32)   # (Tm1, B, F)
    wpt_tm = jnp.pad(wpt_tm, ((0, 0), (0, B_pad - B), (0, 0)))
    wpt_flat = wpt_tm.reshape(Tm1 * B_pad, wpt_feat_dim)

    # Time-invariant features (pn_feat, z_all) — concatenated once, never
    # broadcast over time.
    const_feat = jnp.concatenate([pn_feat, z_all], axis=-1).astype(jnp.float32)
    const_feat = jnp.pad(const_feat, ((0, B_pad - B), (0, 0)))          # (B_pad, const_dim)

    # Weight prep (PyTorch layout: W_ih is (4H, input) with input columns
    # ordered [wpt_feat | pn_feat | z_all], rows ordered i,f,g,o).
    w_ih = w_ih.astype(jnp.float32)
    wih_wpt_t = jnp.transpose(w_ih[:, :wpt_feat_dim])                   # (F, 4H)
    wih_const_t = jnp.transpose(w_ih[:, wpt_feat_dim:])                 # (const_dim, 4H)
    whh_t = jnp.transpose(w_hh).astype(jnp.float32)                     # (H, 4H)
    b_all = (b_ih + b_hh).reshape(1, 4 * H).astype(jnp.float32)
    wpos_t = jnp.transpose(w_pos).astype(jnp.float32)                   # (H, wpt_dim)
    bpos = b_pos.reshape(1, wpt_dim).astype(jnp.float32)

    # Single-program kernel: everything resident in VMEM (tens of KB), no grid.
    vmem_spec = pl.BlockSpec(memory_space=pltpu.MemorySpace.VMEM)
    out_flat = pl.pallas_call(
        _lstm_decoder_kernel,
        out_shape=jax.ShapeDtypeStruct((Tm1 * B_pad, wpt_dim), jnp.float32),
        in_specs=[vmem_spec] * 8,
        out_specs=vmem_spec,
        scratch_shapes=[pltpu.VMEM((Tm1 * B_pad, H), jnp.float32)],
    )(wpt_flat, const_feat, wih_wpt_t, wih_const_t, whh_t, b_all, wpos_t, bpos)

    out_tm = out_flat.reshape(Tm1, B_pad, wpt_dim)[:, :B, :]
    return jnp.transpose(out_tm, (1, 0, 2))   # (B, T-1, wpt_dim)


# -------------------------- pure-JAX reference --------------------------------


def lstm_decoder_reference(pn_feat, wpt_feats, z_all, params):
    w_ih, w_hh, b_ih, b_hh, w_pos, b_pos = (
        params["w_ih"], params["w_hh"], params["b_ih"], params["b_hh"],
        params["w_pos"], params["b_pos"],
    )
    B, Tm1, _ = wpt_feats.shape
    H = w_hh.shape[1]
    h = jnp.zeros((B, H), jnp.float32)
    c = jnp.zeros((B, H), jnp.float32)
    outs = []
    for i in range(Tm1):
        x = jnp.concatenate([wpt_feats[:, i], pn_feat, z_all], axis=-1)
        gates = x @ w_ih.T + h @ w_hh.T + b_ih + b_hh
        i_g = jax.nn.sigmoid(gates[:, 0 * H:1 * H])
        f_g = jax.nn.sigmoid(gates[:, 1 * H:2 * H])
        g_g = jnp.tanh(gates[:, 2 * H:3 * H])
        o_g = jax.nn.sigmoid(gates[:, 3 * H:4 * H])
        c = f_g * c + i_g * g_g
        h = o_g * jnp.tanh(c)
        outs.append(h)
    out = jnp.stack(outs, axis=1)          # (B, T-1, H)
    return out @ w_pos.T + b_pos           # (B, T-1, wpt_dim)


# --------------------------------- main ---------------------------------------


if __name__ == "__main__":
    # Small shapes consistent with the module signature.
    batch = 2
    pcd_feat_dim = 32
    wpt_feat_dim = 16
    z_feat_dim = 16
    hidden_dim = 32
    num_steps = 8
    wpt_dim = 9
    input_size = wpt_feat_dim + pcd_feat_dim + z_feat_dim

    key = jax.random.PRNGKey(0)
    ks = jax.random.split(key, 9)

    scale = 1.0 / jnp.sqrt(hidden_dim)
    params = {
        "w_ih": jax.random.uniform(ks[0], (4 * hidden_dim, input_size),
                                   jnp.float32, -scale, scale),
        "w_hh": jax.random.uniform(ks[1], (4 * hidden_dim, hidden_dim),
                                   jnp.float32, -scale, scale),
        "b_ih": jax.random.uniform(ks[2], (4 * hidden_dim,),
                                   jnp.float32, -scale, scale),
        "b_hh": jax.random.uniform(ks[3], (4 * hidden_dim,),
                                   jnp.float32, -scale, scale),
        "w_pos": jax.random.uniform(ks[4], (wpt_dim, hidden_dim),
                                    jnp.float32, -scale, scale),
        "b_pos": jax.random.uniform(ks[5], (wpt_dim,),
                                    jnp.float32, -scale, scale),
    }

    pn_feat = jax.random.normal(ks[6], (batch, pcd_feat_dim), jnp.float32)
    wpt_feats = jax.random.normal(ks[7], (batch, num_steps - 1, wpt_feat_dim),
                                  jnp.float32)
    z_all = jax.random.normal(ks[8], (batch, z_feat_dim), jnp.float32)

    out = lstm_decoder_forward(pn_feat, wpt_feats, z_all, params)
    out = jax.block_until_ready(out)

    ref = lstm_decoder_reference(pn_feat, wpt_feats, z_all, params)
    assert out.shape == (batch, num_steps - 1, wpt_dim), out.shape
    assert jnp.allclose(out, ref, atol=1e-4, rtol=1e-4), (
        float(jnp.max(jnp.abs(out - ref))))

    print("KERNEL_OK")
</pallas_src>

<mosaic_0001>
module attributes {stable_mosaic.version = 11 : i64} {
  func.func @_lstm_decoder_kernel(%arg0: memref<56x16xf32, #tpu.memory_space<vmem>>, %arg1: memref<8x48xf32, #tpu.memory_space<vmem>>, %arg2: memref<16x128xf32, #tpu.memory_space<vmem>>, %arg3: memref<48x128xf32, #tpu.memory_space<vmem>>, %arg4: memref<32x128xf32, #tpu.memory_space<vmem>>, %arg5: memref<1x128xf32, #tpu.memory_space<vmem>>, %arg6: memref<32x9xf32, #tpu.memory_space<vmem>>, %arg7: memref<1x9xf32, #tpu.memory_space<vmem>>, %arg8: memref<56x9xf32, #tpu.memory_space<vmem>>, %arg9: memref<56x32xf32, #tpu.memory_space<vmem>>) attributes {dimension_semantics = [], scalar_prefetch = 0 : i64, scratch_operands = 1 : i64, tpu.core_type = #tpu.core_type<tc>} {
    %c0 = arith.constant 0 : index
    %c0_0 = arith.constant 0 : index
    %0 = vector.load %arg0[%c0, %c0_0] : memref<56x16xf32, #tpu.memory_space<vmem>>, vector<56x16xf32>
    %c0_1 = arith.constant 0 : index
    %c0_2 = arith.constant 0 : index
    %1 = vector.load %arg2[%c0_1, %c0_2] : memref<16x128xf32, #tpu.memory_space<vmem>>, vector<16x128xf32>
    %cst = arith.constant dense<0.000000e+00> : vector<56x128xf32>
    %2 = tpu.matmul %0, %1, %cst {dimension_numbers = #tpu.dot_dimension_numbers<[1], [0], [0], [1], [0, 0, 1, 1], [], []>} : vector<56x16xf32>, vector<16x128xf32>, vector<56x128xf32> -> vector<56x128xf32>
    %c0_3 = arith.constant 0 : index
    %c0_4 = arith.constant 0 : index
    %3 = vector.load %arg1[%c0_3, %c0_4] : memref<8x48xf32, #tpu.memory_space<vmem>>, vector<8x48xf32>
    %c0_5 = arith.constant 0 : index
    %c0_6 = arith.constant 0 : index
    %4 = vector.load %arg3[%c0_5, %c0_6] : memref<48x128xf32, #tpu.memory_space<vmem>>, vector<48x128xf32>
    %cst_7 = arith.constant dense<0.000000e+00> : vector<8x128xf32>
    %5 = tpu.matmul %3, %4, %cst_7 {dimension_numbers = #tpu.dot_dimension_numbers<[1], [0], [0], [1], [0, 0, 1, 1], [], []>} : vector<8x48xf32>, vector<48x128xf32>, vector<8x128xf32> -> vector<8x128xf32>
    %c0_8 = arith.constant 0 : index
    %c0_9 = arith.constant 0 : index
    %6 = vector.load %arg5[%c0_8, %c0_9] : memref<1x128xf32, #tpu.memory_space<vmem>>, vector<1x128xf32>
    %7 = vector.broadcast %6 : vector<1x128xf32> to vector<8x128xf32>
    %8 = arith.addf %5, %7 : vector<8x128xf32>
    %c0_10 = arith.constant 0 : index
    %c0_11 = arith.constant 0 : index
    %9 = vector.load %arg4[%c0_10, %c0_11] : memref<32x128xf32, #tpu.memory_space<vmem>>, vector<32x128xf32>
    %cst_12 = arith.constant 0.000000e+00 : f32
    %10 = vector.broadcast %cst_12 : f32 to vector<8x32xf32>
    %cst_13 = arith.constant 0.000000e+00 : f32
    %11 = vector.broadcast %cst_13 : f32 to vector<8x32xf32>
    %12 = vector.extract_strided_slice %2 {offsets = [0, 0], sizes = [8, 128], strides = [1, 1]} : vector<56x128xf32> to vector<8x128xf32>
    %13 = arith.addf %12, %8 : vector<8x128xf32>
    %cst_14 = arith.constant dense<0.000000e+00> : vector<8x128xf32>
    %14 = tpu.matmul %10, %9, %cst_14 {dimension_numbers = #tpu.dot_dimension_numbers<[1], [0], [0], [1], [0, 0, 1, 1], [], []>} : vector<8x32xf32>, vector<32x128xf32>, vector<8x128xf32> -> vector<8x128xf32>
    %15 = arith.addf %13, %14 : vector<8x128xf32>
    %16 = vector.extract_strided_slice %15 {offsets = [0, 0], sizes = [8, 32], strides = [1, 1]} : vector<8x128xf32> to vector<8x32xf32>
    %17 = arith.negf %16 : vector<8x32xf32>
    %18 = math.exp %17 : vector<8x32xf32>
    %cst_15 = arith.constant 1.000000e+00 : f32
    %19 = vector.broadcast %cst_15 : f32 to vector<8x32xf32>
    %20 = arith.addf %19, %18 : vector<8x32xf32>
    %21 = arith.divf %19, %20 : vector<8x32xf32>
    %22 = vector.extract_strided_slice %15 {offsets = [0, 32], sizes = [8, 32], strides = [1, 1]} : vector<8x128xf32> to vector<8x32xf32>
    %23 = arith.negf %22 : vector<8x32xf32>
    %24 = math.exp %23 : vector<8x32xf32>
    %cst_16 = arith.constant 1.000000e+00 : f32
    %25 = vector.broadcast %cst_16 : f32 to vector<8x32xf32>
    %26 = arith.addf %25, %24 : vector<8x32xf32>
    %27 = arith.divf %25, %26 : vector<8x32xf32>
    %28 = vector.extract_strided_slice %15 {offsets = [0, 64], sizes = [8, 32], strides = [1, 1]} : vector<8x128xf32> to vector<8x32xf32>
    %29 = math.tanh %28 : vector<8x32xf32>
    %30 = vector.extract_strided_slice %15 {offsets = [0, 96], sizes = [8, 32], strides = [1, 1]} : vector<8x128xf32> to vector<8x32xf32>
    %31 = arith.negf %30 : vector<8x32xf32>
    %32 = math.exp %31 : vector<8x32xf32>
    %cst_17 = arith.constant 1.000000e+00 : f32
    %33 = vector.broadcast %cst_17 : f32 to vector<8x32xf32>
    %34 = arith.addf %33, %32 : vector<8x32xf32>
    %35 = arith.divf %33, %34 : vector<8x32xf32>
    %36 = arith.mulf %27, %11 : vector<8x32xf32>
    %37 = arith.mulf %21, %29 : vector<8x32xf32>
    %38 = arith.addf %36, %37 : vector<8x32xf32>
    %39 = math.tanh %38 : vector<8x32xf32>
    %40 = arith.mulf %35, %39 : vector<8x32xf32>
    %c0_18 = arith.constant 0 : index
    %c0_19 = arith.constant 0 : index
    %41 = vector.load %arg9[%c0_18, %c0_19] : memref<56x32xf32, #tpu.memory_space<vmem>>, vector<8x32xf32>
    tpu.vector_store %arg9[%c0_18, %c0_19], %40 {strides = array<i32>} : memref<56x32xf32, #tpu.memory_space<vmem>>, vector<8x32xf32>,
    %42 = vector.extract_strided_slice %2 {offsets = [8, 0], sizes = [8, 128], strides = [1, 1]} : vector<56x128xf32> to vector<8x128xf32>
    %43 = arith.addf %42, %8 : vector<8x128xf32>
    %cst_20 = arith.constant dense<0.000000e+00> : vector<8x128xf32>
    %44 = tpu.matmul %40, %9, %cst_20 {dimension_numbers = #tpu.dot_dimension_numbers<[1], [0], [0], [1], [0, 0, 1, 1], [], []>} : vector<8x32xf32>, vector<32x128xf32>, vector<8x128xf32> -> vector<8x128xf32>
    %45 = arith.addf %43, %44 : vector<8x128xf32>
    %46 = vector.extract_strided_slice %45 {offsets = [0, 0], sizes = [8, 32], strides = [1, 1]} : vector<8x128xf32> to vector<8x32xf32>
    %47 = arith.negf %46 : vector<8x32xf32>
    %48 = math.exp %47 : vector<8x32xf32>
    %cst_21 = arith.constant 1.000000e+00 : f32
    %49 = vector.broadcast %cst_21 : f32 to vector<8x32xf32>
    %50 = arith.addf %49, %48 : vector<8x32xf32>
    %51 = arith.divf %49, %50 : vector<8x32xf32>
    %52 = vector.extract_strided_slice %45 {offsets = [0, 32], sizes = [8, 32], strides = [1, 1]} : vector<8x128xf32> to vector<8x32xf32>
    %53 = arith.negf %52 : vector<8x32xf32>
    %54 = math.exp %53 : vector<8x32xf32>
    %cst_22 = arith.constant 1.000000e+00 : f32
    %55 = vector.broadcast %cst_22 : f32 to vector<8x32xf32>
    %56 = arith.addf %55, %54 : vector<8x32xf32>
    %57 = arith.divf %55, %56 : vector<8x32xf32>
    %58 = vector.extract_strided_slice %45 {offsets = [0, 64], sizes = [8, 32], strides = [1, 1]} : vector<8x128xf32> to vector<8x32xf32>
    %59 = math.tanh %58 : vector<8x32xf32>
    %60 = vector.extract_strided_slice %45 {offsets = [0, 96], sizes = [8, 32], strides = [1, 1]} : vector<8x128xf32> to vector<8x32xf32>
    %61 = arith.negf %60 : vector<8x32xf32>
    %62 = math.exp %61 : vector<8x32xf32>
    %cst_23 = arith.constant 1.000000e+00 : f32
    %63 = vector.broadcast %cst_23 : f32 to vector<8x32xf32>
    %64 = arith.addf %63, %62 : vector<8x32xf32>
    %65 = arith.divf %63, %64 : vector<8x32xf32>
    %66 = arith.mulf %57, %38 : vector<8x32xf32>
    %67 = arith.mulf %51, %59 : vector<8x32xf32>
    %68 = arith.addf %66, %67 : vector<8x32xf32>
    %69 = math.tanh %68 : vector<8x32xf32>
    %70 = arith.mulf %65, %69 : vector<8x32xf32>
    %c8 = arith.constant 8 : index
    %c0_24 = arith.constant 0 : index
    %71 = vector.load %arg9[%c8, %c0_24] : memref<56x32xf32, #tpu.memory_space<vmem>>, vector<8x32xf32>
    tpu.vector_store %arg9[%c8, %c0_24], %70 {strides = array<i32>} : memref<56x32xf32, #tpu.memory_space<vmem>>, vector<8x32xf32>,
    %72 = vector.extract_strided_slice %2 {offsets = [16, 0], sizes = [8, 128], strides = [1, 1]} : vector<56x128xf32> to vector<8x128xf32>
    %73 = arith.addf %72, %8 : vector<8x128xf32>
    %cst_25 = arith.constant dense<0.000000e+00> : vector<8x128xf32>
    %74 = tpu.matmul %70, %9, %cst_25 {dimension_numbers = #tpu.dot_dimension_numbers<[1], [0], [0], [1], [0, 0, 1, 1], [], []>} : vector<8x32xf32>, vector<32x128xf32>, vector<8x128xf32> -> vector<8x128xf32>
    %75 = arith.addf %73, %74 : vector<8x128xf32>
    %76 = vector.extract_strided_slice %75 {offsets = [0, 0], sizes = [8, 32], strides = [1, 1]} : vector<8x128xf32> to vector<8x32xf32>
    %77 = arith.negf %76 : vector<8x32xf32>
    %78 = math.exp %77 : vector<8x32xf32>
    %cst_26 = arith.constant 1.000000e+00 : f32
    %79 = vector.broadcast %cst_26 : f32 to vector<8x32xf32>
    %80 = arith.addf %79, %78 : vector<8x32xf32>
    %81 = arith.divf %79, %80 : vector<8x32xf32>
    %82 = vector.extract_strided_slice %75 {offsets = [0, 32], sizes = [8, 32], strides = [1, 1]} : vector<8x128xf32> to vector<8x32xf32>
    %83 = arith.negf %82 : vector<8x32xf32>
    %84 = math.exp %83 : vector<8x32xf32>
    %cst_27 = arith.constant 1.000000e+00 : f32
    %85 = vector.broadcast %cst_27 : f32 to vector<8x32xf32>
    %86 = arith.addf %85, %84 : vector<8x32xf32>
    %87 = arith.divf %85, %86 : vector<8x32xf32>
    %88 = vector.extract_strided_slice %75 {offsets = [0, 64], sizes = [8, 32], strides = [1, 1]} : vector<8x128xf32> to vector<8x32xf32>
    %89 = math.tanh %88 : vector<8x32xf32>
    %90 = vector.extract_strided_slice %75 {offsets = [0, 96], sizes = [8, 32], strides = [1, 1]} : vector<8x128xf32> to vector<8x32xf32>
    %91 = arith.negf %90 : vector<8x32xf32>
    %92 = math.exp %91 : vector<8x32xf32>
    %cst_28 = arith.constant 1.000000e+00 : f32
    %93 = vector.broadcast %cst_28 : f32 to vector<8x32xf32>
    %94 = arith.addf %93, %92 : vector<8x32xf32>
    %95 = arith.divf %93, %94 : vector<8x32xf32>
    %96 = arith.mulf %87, %68 : vector<8x32xf32>
    %97 = arith.mulf %81, %89 : vector<8x32xf32>
    %98 = arith.addf %96, %97 : vector<8x32xf32>
    %99 = math.tanh %98 : vector<8x32xf32>
    %100 = arith.mulf %95, %99 : vector<8x32xf32>
    %c16 = arith.constant 16 : index
    %c0_29 = arith.constant 0 : index
    %101 = vector.load %arg9[%c16, %c0_29] : memref<56x32xf32, #tpu.memory_space<vmem>>, vector<8x32xf32>
    tpu.vector_store %arg9[%c16, %c0_29], %100 {strides = array<i32>} : memref<56x32xf32, #tpu.memory_space<vmem>>, vector<8x32xf32>,
    %102 = vector.extract_strided_slice %2 {offsets = [24, 0], sizes = [8, 128], strides = [1, 1]} : vector<56x128xf32> to vector<8x128xf32>
    %103 = arith.addf %102, %8 : vector<8x128xf32>
    %cst_30 = arith.constant dense<0.000000e+00> : vector<8x128xf32>
    %104 = tpu.matmul %100, %9, %cst_30 {dimension_numbers = #tpu.dot_dimension_numbers<[1], [0], [0], [1], [0, 0, 1, 1], [], []>} : vector<8x32xf32>, vector<32x128xf32>, vector<8x128xf32> -> vector<8x128xf32>
    %105 = arith.addf %103, %104 : vector<8x128xf32>
    %106 = vector.extract_strided_slice %105 {offsets = [0, 0], sizes = [8, 32], strides = [1, 1]} : vector<8x128xf32> to vector<8x32xf32>
    %107 = arith.negf %106 : vector<8x32xf32>
    %108 = math.exp %107 : vector<8x32xf32>
    %cst_31 = arith.constant 1.000000e+00 : f32
    %109 = vector.broadcast %cst_31 : f32 to vector<8x32xf32>
    %110 = arith.addf %109, %108 : vector<8x32xf32>
    %111 = arith.divf %109, %110 : vector<8x32xf32>
    %112 = vector.extract_strided_slice %105 {offsets = [0, 32], sizes = [8, 32], strides = [1, 1]} : vector<8x128xf32> to vector<8x32xf32>
    %113 = arith.negf %112 : vector<8x32xf32>
    %114 = math.exp %113 : vector<8x32xf32>
    %cst_32 = arith.constant 1.000000e+00 : f32
    %115 = vector.broadcast %cst_32 : f32 to vector<8x32xf32>
    %116 = arith.addf %115, %114 : vector<8x32xf32>
    %117 = arith.divf %115, %116 : vector<8x32xf32>
    %118 = vector.extract_strided_slice %105 {offsets = [0, 64], sizes = [8, 32], strides = [1, 1]} : vector<8x128xf32> to vector<8x32xf32>
    %119 = math.tanh %118 : vector<8x32xf32>
    %120 = vector.extract_strided_slice %105 {offsets = [0, 96], sizes = [8, 32], strides = [1, 1]} : vector<8x128xf32> to vector<8x32xf32>
    %121 = arith.negf %120 : vector<8x32xf32>
    %122 = math.exp %121 : vector<8x32xf32>
    %cst_33 = arith.constant 1.000000e+00 : f32
    %123 = vector.broadcast %cst_33 : f32 to vector<8x32xf32>
    %124 = arith.addf %123, %122 : vector<8x32xf32>
    %125 = arith.divf %123, %124 : vector<8x32xf32>
    %126 = arith.mulf %117, %98 : vector<8x32xf32>
    %127 = arith.mulf %111, %119 : vector<8x32xf32>
    %128 = arith.addf %126, %127 : vector<8x32xf32>
    %129 = math.tanh %128 : vector<8x32xf32>
    %130 = arith.mulf %125, %129 : vector<8x32xf32>
    %c24 = arith.constant 24 : index
    %c0_34 = arith.constant 0 : index
    %131 = vector.load %arg9[%c24, %c0_34] : memref<56x32xf32, #tpu.memory_space<vmem>>, vector<8x32xf32>
    tpu.vector_store %arg9[%c24, %c0_34], %130 {strides = array<i32>} : memref<56x32xf32, #tpu.memory_space<vmem>>, vector<8x32xf32>,
    %132 = vector.extract_strided_slice %2 {offsets = [32, 0], sizes = [8, 128], strides = [1, 1]} : vector<56x128xf32> to vector<8x128xf32>
    %133 = arith.addf %132, %8 : vector<8x128xf32>
    %cst_35 = arith.constant dense<0.000000e+00> : vector<8x128xf32>
    %134 = tpu.matmul %130, %9, %cst_35 {dimension_numbers = #tpu.dot_dimension_numbers<[1], [0], [0], [1], [0, 0, 1, 1], [], []>} : vector<8x32xf32>, vector<32x128xf32>, vector<8x128xf32> -> vector<8x128xf32>
    %135 = arith.addf %133, %134 : vector<8x128xf32>
    %136 = vector.extract_strided_slice %135 {offsets = [0, 0], sizes = [8, 32], strides = [1, 1]} : vector<8x128xf32> to vector<8x32xf32>
    %137 = arith.negf %136 : vector<8x32xf32>
    %138 = math.exp %137 : vector<8x32xf32>
    %cst_36 = arith.constant 1.000000e+00 : f32
    %139 = vector.broadcast %cst_36 : f32 to vector<8x32xf32>
    %140 = arith.addf %139, %138 : vector<8x32xf32>
    %141 = arith.divf %139, %140 : vector<8x32xf32>
    %142 = vector.extract_strided_slice %135 {offsets = [0, 32], sizes = [8, 32], strides = [1, 1]} : vector<8x128xf32> to vector<8x32xf32>
    %143 = arith.negf %142 : vector<8x32xf32>
    %144 = math.exp %143 : vector<8x32xf32>
    %cst_37 = arith.constant 1.000000e+00 : f32
    %145 = vector.broadcast %cst_37 : f32 to vector<8x32xf32>
    %146 = arith.addf %145, %144 : vector<8x32xf32>
    %147 = arith.divf %145, %146 : vector<8x32xf32>
    %148 = vector.extract_strided_slice %135 {offsets = [0, 64], sizes = [8, 32], strides = [1, 1]} : vector<8x128xf32> to vector<8x32xf32>
    %149 = math.tanh %148 : vector<8x32xf32>
    %150 = vector.extract_strided_slice %135 {offsets = [0, 96], sizes = [8, 32], strides = [1, 1]} : vector<8x128xf32> to vector<8x32xf32>
    %151 = arith.negf %150 : vector<8x32xf32>
    %152 = math.exp %151 : vector<8x32xf32>
    %cst_38 = arith.constant 1.000000e+00 : f32
    %153 = vector.broadcast %cst_38 : f32 to vector<8x32xf32>
    %154 = arith.addf %153, %152 : vector<8x32xf32>
    %155 = arith.divf %153, %154 : vector<8x32xf32>
    %156 = arith.mulf %147, %128 : vector<8x32xf32>
    %157 = arith.mulf %141, %149 : vector<8x32xf32>
    %158 = arith.addf %156, %157 : vector<8x32xf32>
    %159 = math.tanh %158 : vector<8x32xf32>
    %160 = arith.mulf %155, %159 : vector<8x32xf32>
    %c32 = arith.constant 32 : index
    %c0_39 = arith.constant 0 : index
    %161 = vector.load %arg9[%c32, %c0_39] : memref<56x32xf32, #tpu.memory_space<vmem>>, vector<8x32xf32>
    tpu.vector_store %arg9[%c32, %c0_39], %160 {strides = array<i32>} : memref<56x32xf32, #tpu.memory_space<vmem>>, vector<8x32xf32>,
    %162 = vector.extract_strided_slice %2 {offsets = [40, 0], sizes = [8, 128], strides = [1, 1]} : vector<56x128xf32> to vector<8x128xf32>
    %163 = arith.addf %162, %8 : vector<8x128xf32>
    %cst_40 = arith.constant dense<0.000000e+00> : vector<8x128xf32>
    %164 = tpu.matmul %160, %9, %cst_40 {dimension_numbers = #tpu.dot_dimension_numbers<[1], [0], [0], [1], [0, 0, 1, 1], [], []>} : vector<8x32xf32>, vector<32x128xf32>, vector<8x128xf32> -> vector<8x128xf32>
    %165 = arith.addf %163, %164 : vector<8x128xf32>
    %166 = vector.extract_strided_slice %165 {offsets = [0, 0], sizes = [8, 32], strides = [1, 1]} : vector<8x128xf32> to vector<8x32xf32>
    %167 = arith.negf %166 : vector<8x32xf32>
    %168 = math.exp %167 : vector<8x32xf32>
    %cst_41 = arith.constant 1.000000e+00 : f32
    %169 = vector.broadcast %cst_41 : f32 to vector<8x32xf32>
    %170 = arith.addf %169, %168 : vector<8x32xf32>
    %171 = arith.divf %169, %170 : vector<8x32xf32>
    %172 = vector.extract_strided_slice %165 {offsets = [0, 32], sizes = [8, 32], strides = [1, 1]} : vector<8x128xf32> to vector<8x32xf32>
    %173 = arith.negf %172 : vector<8x32xf32>
    %174 = math.exp %173 : vector<8x32xf32>
    %cst_42 = arith.constant 1.000000e+00 : f32
    %175 = vector.broadcast %cst_42 : f32 to vector<8x32xf32>
    %176 = arith.addf %175, %174 : vector<8x32xf32>
    %177 = arith.divf %175, %176 : vector<8x32xf32>
    %178 = vector.extract_strided_slice %165 {offsets = [0, 64], sizes = [8, 32], strides = [1, 1]} : vector<8x128xf32> to vector<8x32xf32>
    %179 = math.tanh %178 : vector<8x32xf32>
    %180 = vector.extract_strided_slice %165 {offsets = [0, 96], sizes = [8, 32], strides = [1, 1]} : vector<8x128xf32> to vector<8x32xf32>
    %181 = arith.negf %180 : vector<8x32xf32>
    %182 = math.exp %181 : vector<8x32xf32>
    %cst_43 = arith.constant 1.000000e+00 : f32
    %183 = vector.broadcast %cst_43 : f32 to vector<8x32xf32>
    %184 = arith.addf %183, %182 : vector<8x32xf32>
    %185 = arith.divf %183, %184 : vector<8x32xf32>
    %186 = arith.mulf %177, %158 : vector<8x32xf32>
    %187 = arith.mulf %171, %179 : vector<8x32xf32>
    %188 = arith.addf %186, %187 : vector<8x32xf32>
    %189 = math.tanh %188 : vector<8x32xf32>
    %190 = arith.mulf %185, %189 : vector<8x32xf32>
    %c40 = arith.constant 40 : index
    %c0_44 = arith.constant 0 : index
    %191 = vector.load %arg9[%c40, %c0_44] : memref<56x32xf32, #tpu.memory_space<vmem>>, vector<8x32xf32>
    tpu.vector_store %arg9[%c40, %c0_44], %190 {strides = array<i32>} : memref<56x32xf32, #tpu.memory_space<vmem>>, vector<8x32xf32>,
    %192 = vector.extract_strided_slice %2 {offsets = [48, 0], sizes = [8, 128], strides = [1, 1]} : vector<56x128xf32> to vector<8x128xf32>
    %193 = arith.addf %192, %8 : vector<8x128xf32>
    %cst_45 = arith.constant dense<0.000000e+00> : vector<8x128xf32>
    %194 = tpu.matmul %190, %9, %cst_45 {dimension_numbers = #tpu.dot_dimension_numbers<[1], [0], [0], [1], [0, 0, 1, 1], [], []>} : vector<8x32xf32>, vector<32x128xf32>, vector<8x128xf32> -> vector<8x128xf32>
    %195 = arith.addf %193, %194 : vector<8x128xf32>
    %196 = vector.extract_strided_slice %195 {offsets = [0, 0], sizes = [8, 32], strides = [1, 1]} : vector<8x128xf32> to vector<8x32xf32>
    %197 = arith.negf %196 : vector<8x32xf32>
    %198 = math.exp %197 : vector<8x32xf32>
    %cst_46 = arith.constant 1.000000e+00 : f32
    %199 = vector.broadcast %cst_46 : f32 to vector<8x32xf32>
    %200 = arith.addf %199, %198 : vector<8x32xf32>
    %201 = arith.divf %199, %200 : vector<8x32xf32>
    %202 = vector.extract_strided_slice %195 {offsets = [0, 32], sizes = [8, 32], strides = [1, 1]} : vector<8x128xf32> to vector<8x32xf32>
    %203 = arith.negf %202 : vector<8x32xf32>
    %204 = math.exp %203 : vector<8x32xf32>
    %cst_47 = arith.constant 1.000000e+00 : f32
    %205 = vector.broadcast %cst_47 : f32 to vector<8x32xf32>
    %206 = arith.addf %205, %204 : vector<8x32xf32>
    %207 = arith.divf %205, %206 : vector<8x32xf32>
    %208 = vector.extract_strided_slice %195 {offsets = [0, 64], sizes = [8, 32], strides = [1, 1]} : vector<8x128xf32> to vector<8x32xf32>
    %209 = math.tanh %208 : vector<8x32xf32>
    %210 = vector.extract_strided_slice %195 {offsets = [0, 96], sizes = [8, 32], strides = [1, 1]} : vector<8x128xf32> to vector<8x32xf32>
    %211 = arith.negf %210 : vector<8x32xf32>
    %212 = math.exp %211 : vector<8x32xf32>
    %cst_48 = arith.constant 1.000000e+00 : f32
    %213 = vector.broadcast %cst_48 : f32 to vector<8x32xf32>
    %214 = arith.addf %213, %212 : vector<8x32xf32>
    %215 = arith.divf %213, %214 : vector<8x32xf32>
    %216 = arith.mulf %207, %188 : vector<8x32xf32>
    %217 = arith.mulf %201, %209 : vector<8x32xf32>
    %218 = arith.addf %216, %217 : vector<8x32xf32>
    %219 = math.tanh %218 : vector<8x32xf32>
    %220 = arith.mulf %215, %219 : vector<8x32xf32>
    %c48 = arith.constant 48 : index
    %c0_49 = arith.constant 0 : index
    %221 = vector.load %arg9[%c48, %c0_49] : memref<56x32xf32, #tpu.memory_space<vmem>>, vector<8x32xf32>
    tpu.vector_store %arg9[%c48, %c0_49], %220 {strides = array<i32>} : memref<56x32xf32, #tpu.memory_space<vmem>>, vector<8x32xf32>,
    %c0_50 = arith.constant 0 : index
    %c0_51 = arith.constant 0 : index
    %222 = vector.load %arg9[%c0_50, %c0_51] : memref<56x32xf32, #tpu.memory_space<vmem>>, vector<56x32xf32>
    %c0_52 = arith.constant 0 : index
    %c0_53 = arith.constant 0 : index
    %223 = vector.load %arg6[%c0_52, %c0_53] : memref<32x9xf32, #tpu.memory_space<vmem>>, vector<32x9xf32>
    %cst_54 = arith.constant dense<0.000000e+00> : vector<56x9xf32>
    %224 = tpu.matmul %222, %223, %cst_54 {dimension_numbers = #tpu.dot_dimension_numbers<[1], [0], [0], [1], [0, 0, 1, 1], [], []>} : vector<56x32xf32>, vector<32x9xf32>, vector<56x9xf32> -> vector<56x9xf32>
    %c0_55 = arith.constant 0 : index
    %c0_56 = arith.constant 0 : index
    %225 = vector.load %arg7[%c0_55, %c0_56] : memref<1x9xf32, #tpu.memory_space<vmem>>, vector<1x9xf32>
    %226 = vector.broadcast %225 : vector<1x9xf32> to vector<56x9xf32>
    %227 = arith.addf %224, %226 : vector<56x9xf32>
    %c0_57 = arith.constant 0 : index
    %c0_58 = arith.constant 0 : index
    %228 = vector.load %arg8[%c0_57, %c0_58] : memref<56x9xf32, #tpu.memory_space<vmem>>, vector<56x9xf32>
    tpu.vector_store %arg8[%c0_57, %c0_58], %227 {strides = array<i32>} : memref<56x9xf32, #tpu.memory_space<vmem>>, vector<56x9xf32>,
    return
  }
}

</mosaic_0001>

<bundles_post_ra>
// kernel: lstm_decoder_forward.1
= control target key start
LH: loop header
LB: loop body
LE: loop exit
PB: predicated region body
PF: predicated region fallthrough
CT: control target
= control target key end

     0   :  { %v1503_v0 = vmov 0.0|0.0   ;;  %vm1504_vm0 = vmmov 0   ;;  %v1505_v3 = vmov 0.0   ;;  %vm38_vm1 = vcmask 130048   ;;  %s1506_s19 = smov 64   ;;  %s1831_s2 = inlined_call_operand.vmem [shape: f32[16,128], index: 2, kind: input, shape index: {}]   ;;  %s1832_s3 = inlined_call_operand.vmem [shape: f32[48,128], index: 3, kind: input, shape index: {}]   ;;  %s1833_s4 = inlined_call_operand.vmem [shape: f32[32,128], index: 4, kind: input, shape index: {}]   ;;  %s1834_s0 = inlined_call_operand.vmem [shape: f32[56,16], index: 0, kind: input, shape index: {}]   ;;  %s1835_s1 = inlined_call_operand.vmem [shape: f32[8,48], index: 1, kind: input, shape index: {}]   ;;  %s1836_s5 = inlined_call_operand.vmem [shape: f32[1,128], index: 5, kind: input, shape index: {}]   ;;  %s1837_s6 = inlined_call_operand.vmem [shape: f32[32,9], index: 6, kind: input, shape index: {}]   ;;  %s1838_s7 = inlined_call_operand.vmem [shape: f32[1,9], index: 7, kind: input, shape index: {}]   ;;  %s1839_s8 = inlined_call_operand.vmem [shape: f32[56,9], index: 8, kind: output, shape index: {}]  }
   0x1   :  { %1424 = vmatprep.subr.bf16.mxu1 %v1503_v0  ;;  %v36_v1 = vld [vmem:[%s1831_s2] sm:$0xff]  ;;  %v37_v2 = vld [vmem:[%s1831_s2 + $0x8] sm:$0xff]  ;;  %1228 = vmatprep.mubr.msk.f32.mxu1 %vm1504_vm0, %v1505_v3  ;;  %v31_v9 = vld [vmem:[%s1834_s0 + $0x10] sm:$0xff]  ;;  %vm174_vm2 = vcmask 392192   ;;  %vm253_vm3 = vcmask 261120   ;;  %vm1114_vm4 = vcmask 72704  }
   0x2   :  { %v1365_v4 = vpack.c.bf16 %v37_v2, %v36_v1  ;;  %v161_v5 = vld [vmem:[%s1832_s3] sm:$0xff]  ;;  %v162_v6 = vld [vmem:[%s1832_s3 + $0x8] sm:$0xff]  ;;  %1364 = vmatprep.subr.bf16.mxu0 %v1503_v0  ;;  %1222 = vmatprep.mubr.msk.f32.mxu0 %vm1504_vm0, %v1505_v3  ;;  %v163_v13 = vld [vmem:[%s1832_s3 + $0x10] sm:$0xff] }
   0x3   :  { %v248_v7 = vld [vmem:[%s1833_s4] sm:$0xff]  ;;  %v249_v8 = vld [vmem:[%s1833_s4 + $0x8] sm:$0xff]  ;;  %v1368_v10 = vpack.c.bf16 %v162_v6, %v161_v5  ;;  %v164_v14 = vld [vmem:[%s1832_s3 + $0x18] sm:$0xff] }
   0x4   :  { %1425 = vmatpush3.bf16.msra.mxu1 %v1365_v4  ;;  %1366 = vmatpush3.bf16.msra.mxu0 %v1365_v4  ;;  %v29_v11 = vld [vmem:[%s1834_s0] sm:$0xff]  ;;  %v1585_v12 = vpack.c.bf16 %v249_v8, %v248_v7  ;;  %v250_v15 = vld [vmem:[%s1833_s4 + $0x10] sm:$0xff]  ;;  %v251_v16 = vld [vmem:[%s1833_s4 + $0x18] sm:$0xff]  ;;  %v1371_v18 = vpack.c.bf16 %v164_v14, %v163_v13 }
   0x5   :  { %1367 = vmatprep.subr.bf16.mxu1 %v1503_v0  ;;  %1376 = vmatprep.subr.bf16.mxu0 %v1503_v0  ;;  %v32_v17 = vld [vmem:[%s1834_s0 + $0x18] sm:$0xff]  ;;  %v30_v19 = vld [vmem:[%s1834_s0 + $0x8] sm:$0xff]  ;;  %v1611_v20 = vpack.c.bf16 %v251_v16, %v250_v15  ;;  %v165_v21 = vld [vmem:[%s1832_s3 + $0x20] sm:$0xff] }
   0x6   :  { %v166_v22 = vld [vmem:[%s1832_s3 + $0x28] sm:$0xff]  ;;  %v33_v23 = vld [vmem:[%s1834_s0 + $0x20] sm:$0xff]  ;;  %v35_v26 = vld [vmem:[%s1834_s0 + $0x30] sm:$0xff] }
   0x7   :  { %1229 = vmatmul.mubr.msk.f32.vlgmr.msra.gmra.mrb[0].mxu1 %vm38_vm1, %v31_v9  ;;  %1223 = vmatmul.mubr.msk.f32.vlgmr.msra.gmra.mrb[0].mxu0 %vm38_vm1, %v29_v11  ;;  %v1374_v24 = vpack.c.bf16 %v166_v22, %v165_v21  ;;  %v34_v25 = vld [vmem:[%s1834_s0 + $0x28] sm:$0xff]  ;;  %v160_v27 = vld [vmem:[%s1835_s1] sm:$0xff]  ;;  %v984_v59 = vld [vmem:[%s1837_s6 + $0x10] sm:$0xff] }
   0x8   :  { %1369 = vmatpush3.bf16.msra.mxu1 %v1368_v10  ;;  %1231 = vmatprep.mubr.msk.f32.mxu1 %vm1504_vm0, %v1505_v3  ;;  %v1133_v40 = vld [vmem:[%s1836_s5] ss:$0 sm:$0xff]  ;;  %s1507_s5 = smov 32   ;;  %v983_v57 = vld [vmem:[%s1837_s6 + $0x8] sm:$0xff]  ;;  %v985_v60 = vld [vmem:[%s1837_s6 + $0x18] sm:$0xff] }
   0x9   :  { %1370 = vmatprep.subr.bf16.mxu1 %v1503_v0  ;;  %1378 = vmatpush3.bf16.msra.mxu0 %v1585_v12  ;;  %v982_v56 = vld [vmem:[%s1837_s6] sm:$0xff]  ;;  %v1422_v61 = vpack.c.bf16 %v985_v60, %v984_v59 }
   0xa   :  { %1225 = vmatprep.mubr.msk.f32.mxu0 %vm1504_vm0, %v1505_v3  ;;  %1379 = vmatprep.subr.bf16.mxu0 %v1503_v0  ;;  %v1419_v58 = vpack.c.bf16 %v983_v57, %v982_v56  ;;  %v1710_v7 = vld [vmem:[%s1838_s7] ss:$0 sm:$0xff] }
   0xb   :  { %1232 = vmatmul.mubr.msk.f32.gmra.mrb[2].mxu1 %vm38_vm1, %v32_v17  ;;  %1226 = vmatmul.mubr.msk.f32.gmra.mrb[2].mxu0 %vm38_vm1, %v30_v19 }
   0xc   :  { %1234 = vmatprep.mubr.msk.f32.mxu1 %vm1504_vm0, %v1505_v3  ;;  %1372 = vmatpush3.bf16.msra.mxu1 %v1371_v18 }
   0xd   :  { %1381 = vmatpush3.bf16.msra.mxu0 %v1611_v20  ;;  %1266 = vmatprep.mubr.msk.f32.mxu0 %vm1504_vm0, %v1505_v3 }
   0xe   :  { %1373 = vmatprep.subr.bf16.mxu1 %v1503_v0  ;;  %1382 = vmatprep.subr.bf16.mxu0 %v1503_v0 }
   0xf   :  { %1235 = vmatmul.mubr.msk.f32.gmra.mrb[4].mxu1 %vm38_vm1, %v33_v23 }
  0x10   :  { %1237 = vmatprep.mubr.msk.f32.mxu1 %vm1504_vm0, %v1505_v3  ;;  %1267 = vmatmul.mubr.f32.vlgmr.msra.gmra.mrb[0].mxu0 %v1505_v3 }
  0x11   :  { %1375 = vmatpush3.bf16.msra.mxu1 %v1374_v24  ;;  %1384 = vmatpush3.bf16.msra.mxu0 %v1585_v12 }
  0x12   :  { %1385 = vmatprep.subr.bf16.mxu0 %v1503_v0  ;;  %1277 = vmatprep.mubr.msk.f32.mxu0 %vm1504_vm0, %v1505_v3 }
  0x13   :  { %1238 = vmatmul.mubr.msk.f32.gmra.mrb[6].mxu1 %vm38_vm1, %v34_v25  ;;  %1418 = vmatprep.subr.bf16.mxu1 %v1503_v0 }
  0x14   :  { %1240 = vmatprep.mubr.msk.f32.mxu1 %vm1504_vm0, %v1505_v3 }
  0x15   :  { %1387 = vmatpush3.bf16.msra.mxu0 %v1611_v20 }
  0x16   :  { %1388 = vmatprep.subr.bf16.mxu0 %v1503_v0 }
  0x17   :  { %1241 = vmatmul.mubr.msk.f32.gmra.mrb[8].mxu1 %vm38_vm1, %v35_v26 }
  0x18   :  { %1255 = vmatprep.mubr.msk.f32.mxu1 %vm1504_vm0, %v1505_v3 }
  0x1b   :  { %1256 = vmatmul.mubr.msk.f32.vlgmr.msra.gmra.mrb[10].mxu1 %vm174_vm2, %v160_v27 }
  0x1c   :  { %1343 = vmatprep.mubr.msk.f32.mxu1 %vm1504_vm0, %v1505_v3  ;;  %1420 = vmatpush3.bf16.msra.mxu1 %v1419_v58 }
  0x1d   :  { %1421 = vmatprep.subr.bf16.mxu1 %v1503_v0 }
  0x20   :  { %1423 = vmatpush3.bf16.msra.mxu1 %v1422_v61 }
  0xda   :  { %v1662_v28 = vpop.f32.mrb[0].mxu1 }
  0xdb   :  { %v1230_v29 = vpop.f32.mrb[1].mxu1 }
  0xde   :  { %v1664_v30 = vpop.f32.mrb[2].mxu1 }
  0xdf   :  { %v1233_v31 = vpop.f32.mrb[3].mxu1 }
  0xe2   :  { %v1666_v32 = vpop.f32.mrb[4].mxu1 }
  0xe3   :  { %v1236_v33 = vpop.f32.mrb[5].mxu1  ;;  %v323_v34 = vpop.f32.mrb[0].mxu0 }
  0xe4   :  { %v1268_v35 = vpop.f32.mrb[1].mxu0 }
  0xe6   :  { %v1668_v36 = vpop.f32.mrb[6].mxu1 }
  0xe7   :  { %v1239_v37 = vpop.f32.mrb[7].mxu1 }
  0xea   :  { %v1670_v38 = vpop.f32.mrb[8].mxu1 }
  0xeb   :  { %v1242_v39 = vpop.f32.mrb[9].mxu1 }
  0xee   :  { %v244_v41 = vpop.f32.mrb[10].mxu1 }
  0xef   :  { %v1675_v42 = vadd.f32 %v1133_v40, %v244_v41  ;;  %v1257_v43 = vpop.f32.mrb[11].mxu1 }
  0xf1   :  { %v1426_v44 = vadd.f32 %v323_v34, %v1675_v42  ;;  %v460_v29 = vadd.f32 %v1675_v42, %v1662_v28 }
  0xf3   :  { %1447 = vtanh.f32 %v1426_v44  ;;  %v1135_v46 = vmul.f32 -1.442695, %v1426_v44 }
  0xf5   :  { %1449 = vpow2.f32 %v1135_v46 }
  0xfd   :  { %v1448_v45 = vpop.eup %1447 }
  0xfe   :  { %337 = vrot.lane.b32.xlu0 %v1448_v45, %s1506_s19 }
  0xff   :  { %v1450_v47 = vpop.eup %1449 }
 0x100   :  { %v331_v48 = vadd.f32 1.0, %v1450_v47 }
 0x102   :  { %1451 = vrcp.f32 %v331_v48 }
 0x10c   :  { %v1452_v49 = vpop.eup %1451 }
 0x10d   :  { %v335_v52 = vmul.f32 0.0, %v1452_v49 }
 0x170   :  { %v338_v50 = vpop.permute.xlu0 %337 }
 0x171   :  { %v340_v51 = vmul.f32 %v1452_v49, %v338_v50 }
 0x173   :  { %342 = vrot.lane.b32.xlu0 %v340_v51, %s1507_s5 }
 0x1e5   :  { %v343_v53 = vpop.permute.xlu0 %342 }
 0x1e6   :  { %v345_v54 = vadd.f32 %v343_v53, %v335_v52 }
 0x1e8   :  { %1453 = vtanh.f32 %v345_v54 }
 0x1f2   :  { %v1454_v55 = vpop.eup %1453 }
 0x1f3   :  { %348 = vrot.lane.b32.xlu1 %v1454_v55, %s1506_s19  ;;  %v563_v55 = vadd.f32 %v1675_v42, %v1664_v30 }
 0x265   :  { %v349_v62 = vpop.permute.xlu1 %348 }
 0x266   :  { %v351_v63 = vmul.f32 %v1452_v49, %v349_v62 }
 0x268   :  { %353 = vrot.lane.b32.xlu1 %v351_v63, %s1507_s5 }
 0x2da   :  { %v354_v1 = vpop.permute.xlu1 %353 }
 0x2db   :  { %356 = vst.msk [vmem:[#allocation2] sm:$0xff] %vm253_vm3, %v354_v1  ;;  %1278 = vmatmul.mubr.msk.f32.vlgmr.msra.gmra.mrb[2].mxu0 %vm253_vm3, %v354_v1 }
 0x2dc   :  { %1390 = vmatpush3.bf16.msra.mxu0 %v1585_v12  ;;  %1288 = vmatprep.mubr.msk.f32.mxu0 %vm1504_vm0, %v1505_v3 }
 0x2dd   :  { %1391 = vmatprep.subr.bf16.mxu0 %v1503_v0 }
 0x2e0   :  { %1393 = vmatpush3.bf16.msra.mxu0 %v1611_v20 }
 0x2e1   :  { %1394 = vmatprep.subr.bf16.mxu0 %v1503_v0 }
 0x2e2   :  { %v975_v2 = vld [vmem:[#allocation2] sm:$0xff] }
 0x2e3   :  { %1344 = vmatmul.mubr.msk.f32.vlgmr.msra.gmra.mrb[12].mxu1 %vm253_vm3, %v975_v2 }
 0x2e4   :  { %1346 = vmatprep.mubr.msk.f32.mxu1 %vm1504_vm0, %v1505_v3 }
 0x3ae   :  { %v426_v4 = vpop.f32.mrb[2].mxu0 }
 0x3af   :  { %v1427_v5 = vadd.f32 %v426_v4, %v1675_v42  ;;  %v1279_v6 = vpop.f32.mrb[3].mxu0 }
 0x3b1   :  { %1455 = vtanh.f32 %v1427_v5  ;;  %v1137_v13 = vmul.f32 -1.442695, %v1427_v5 }
 0x3b3   :  { %1457 = vpow2.f32 %v1137_v13 }
 0x3b6   :  { %v1080_v8 = vpop.f32.mrb[12].mxu1 }
 0x3b7   :  { %v1081_v9 = vadd.f32 %v1710_v7, %v1080_v8  ;;  %v1345_v10 = vpop.f32.mrb[13].mxu1 }
 0x3b9   :  { %1115 = vst.msk [vmem:[%s1839_s8] sm:$0xff] %vm1114_vm4, %v1081_v9 }
 0x3bb   :  { %v1456_v11 = vpop.eup %1455 }
 0x3bc   :  { %440 = vrot.lane.b32.xlu0 %v1456_v11, %s1506_s19 }
 0x3bd   :  { %v1458_v14 = vpop.eup %1457 }
 0x3be   :  { %v434_v15 = vadd.f32 1.0, %v1458_v14 }
 0x3c0   :  { %1459 = vrcp.f32 %v434_v15 }
 0x3ca   :  { %v1460_v16 = vpop.eup %1459 }
 0x3cb   :  { %v438_v19 = vmul.f32 %v1460_v16, %v345_v54 }
 0x42e   :  { %v441_v17 = vpop.permute.xlu0 %440 }
 0x42f   :  { %v443_v18 = vmul.f32 %v1460_v16, %v441_v17 }
 0x431   :  { %445 = vrot.lane.b32.xlu1 %v443_v18, %s1507_s5 }
 0x4a3   :  { %v446_v21 = vpop.permute.xlu1 %445 }
 0x4a4   :  { %v448_v22 = vadd.f32 %v446_v21, %v438_v19 }
 0x4a6   :  { %1461 = vtanh.f32 %v448_v22 }
 0x4b0   :  { %v1462_v23 = vpop.eup %1461 }
 0x4b1   :  { %451 = vrot.lane.b32.xlu0 %v1462_v23, %s1506_s19 }
 0x523   :  { %v452_v24 = vpop.permute.xlu0 %451 }
 0x524   :  { %v454_v25 = vmul.f32 %v1460_v16, %v452_v24  ;;  %v666_v16 = vadd.f32 %v1675_v42, %v1666_v32 }
 0x526   :  { %456 = vrot.lane.b32.xlu1 %v454_v25, %s1507_s5 }
 0x598   :  { %v457_v26 = vpop.permute.xlu1 %456 }
 0x599   :  { %459 = vst.msk [vmem:[#allocation2 + $0x8] sm:$0xff] %vm253_vm3, %v457_v26  ;;  %1289 = vmatmul.mubr.msk.f32.vlgmr.msra.gmra.mrb[4].mxu0 %vm253_vm3, %v457_v26 }
 0x59a   :  { %1396 = vmatpush3.bf16.msra.mxu0 %v1585_v12  ;;  %1299 = vmatprep.mubr.msk.f32.mxu0 %vm1504_vm0, %v1505_v3 }
 0x59b   :  { %1397 = vmatprep.subr.bf16.mxu0 %v1503_v0 }
 0x59e   :  { %1399 = vmatpush3.bf16.msra.mxu0 %v1611_v20 }
 0x59f   :  { %1400 = vmatprep.subr.bf16.mxu0 %v1503_v0 }
 0x5a0   :  { %v976_v27 = vld [vmem:[#allocation2 + $0x8] sm:$0xff] }
 0x5a1   :  { %1347 = vmatmul.mubr.msk.f32.gmra.mrb[14].mxu1 %vm253_vm3, %v976_v27 }
 0x5a2   :  { %1349 = vmatprep.mubr.msk.f32.mxu1 %vm1504_vm0, %v1505_v3 }
 0x66c   :  { %v529_v31 = vpop.f32.mrb[4].mxu0 }
 0x66d   :  { %v533_v33 = vadd.f32 %v529_v31, %v460_v29  ;;  %v1290_v34 = vpop.f32.mrb[5].mxu0 }
 0x66f   :  { %1463 = vtanh.f32 %v533_v33  ;;  %v1139_v41 = vmul.f32 -1.442695, %v533_v33 }
 0x671   :  { %1465 = vpow2.f32 %v1139_v41 }
 0x674   :  { %v1085_v35 = vpop.f32.mrb[14].mxu1 }
 0x675   :  { %v1086_v37 = vadd.f32 %v1710_v7, %v1085_v35  ;;  %v1348_v39 = vpop.f32.mrb[15].mxu1 }
 0x677   :  { %1116 = vst.msk [vmem:[%s1839_s8 + $0x8] sm:$0xff] %vm1114_vm4, %v1086_v37 }
 0x679   :  { %v1464_v40 = vpop.eup %1463 }
 0x67a   :  { %543 = vrot.lane.b32.xlu0 %v1464_v40, %s1506_s19 }
 0x67b   :  { %v1466_v43 = vpop.eup %1465 }
 0x67c   :  { %v537_v28 = vadd.f32 1.0, %v1466_v43 }
 0x67e   :  { %1467 = vrcp.f32 %v537_v28  ;;  %v769_v28 = vadd.f32 %v1675_v42, %v1668_v36 }
 0x688   :  { %v1468_v44 = vpop.eup %1467 }
 0x689   :  { %v541_v47 = vmul.f32 %v1468_v44, %v448_v22 }
 0x6ec   :  { %v544_v45 = vpop.permute.xlu0 %543 }
 0x6ed   :  { %v546_v46 = vmul.f32 %v1468_v44, %v544_v45 }
 0x6ef   :  { %548 = vrot.lane.b32.xlu1 %v546_v46, %s1507_s5 }
 0x761   :  { %v549_v48 = vpop.permute.xlu1 %548 }
 0x762   :  { %v551_v49 = vadd.f32 %v549_v48, %v541_v47 }
 0x764   :  { %1469 = vtanh.f32 %v551_v49 }
 0x76e   :  { %v1470_v50 = vpop.eup %1469 }
 0x76f   :  { %554 = vrot.lane.b32.xlu0 %v1470_v50, %s1506_s19 }
 0x7e1   :  { %v555_v51 = vpop.permute.xlu0 %554 }
 0x7e2   :  { %v557_v52 = vmul.f32 %v1468_v44, %v555_v51 }
 0x7e4   :  { %559 = vrot.lane.b32.xlu1 %v557_v52, %s1507_s5 }
 0x856   :  { %v560_v53 = vpop.permute.xlu1 %559 }
 0x857   :  { %562 = vst.msk [vmem:[#allocation2 + $0x10] sm:$0xff] %vm253_vm3, %v560_v53  ;;  %1300 = vmatmul.mubr.msk.f32.vlgmr.msra.gmra.mrb[6].mxu0 %vm253_vm3, %v560_v53 }
 0x858   :  { %1402 = vmatpush3.bf16.msra.mxu0 %v1585_v12  ;;  %1310 = vmatprep.mubr.msk.f32.mxu0 %vm1504_vm0, %v1505_v3 }
 0x859   :  { %1403 = vmatprep.subr.bf16.mxu0 %v1503_v0 }
 0x85c   :  { %1405 = vmatpush3.bf16.msra.mxu0 %v1611_v20 }
 0x85d   :  { %1406 = vmatprep.subr.bf16.mxu0 %v1503_v0 }
 0x85e   :  { %v977_v54 = vld [vmem:[#allocation2 + $0x10] sm:$0xff] }
 0x85f   :  { %1350 = vmatmul.mubr.msk.f32.gmra.mrb[16].mxu1 %vm253_vm3, %v977_v54 }
 0x860   :  { %1352 = vmatprep.mubr.msk.f32.mxu1 %vm1504_vm0, %v1505_v3 }
 0x92a   :  { %v632_v56 = vpop.f32.mrb[6].mxu0 }
 0x92b   :  { %v636_v57 = vadd.f32 %v632_v56, %v563_v55  ;;  %v1301_v58 = vpop.f32.mrb[7].mxu0 }
 0x92d   :  { %1471 = vtanh.f32 %v636_v57  ;;  %v1141_v63 = vmul.f32 -1.442695, %v636_v57 }
 0x92f   :  { %1473 = vpow2.f32 %v1141_v63 }
 0x932   :  { %v1090_v59 = vpop.f32.mrb[16].mxu1 }
 0x933   :  { %v1091_v60 = vadd.f32 %v1710_v7, %v1090_v59  ;;  %v1351_v61 = vpop.f32.mrb[17].mxu1 }
 0x934   :  { %v872_v61 = vadd.f32 %v1675_v42, %v1670_v38 }
 0x935   :  { %1117 = vst.msk [vmem:[%s1839_s8 + $0x10] sm:$0xff] %vm1114_vm4, %v1091_v60 }
 0x937   :  { %v1472_v62 = vpop.eup %1471 }
 0x938   :  { %646 = vrot.lane.b32.xlu0 %v1472_v62, %s1506_s19 }
 0x939   :  { %v1474_v1 = vpop.eup %1473 }
 0x93a   :  { %v640_v30 = vadd.f32 1.0, %v1474_v1 }
 0x93c   :  { %1475 = vrcp.f32 %v640_v30 }
 0x946   :  { %v1476_v2 = vpop.eup %1475 }
 0x947   :  { %v644_v6 = vmul.f32 %v1476_v2, %v551_v49 }
 0x9aa   :  { %v647_v4 = vpop.permute.xlu0 %646 }
 0x9ab   :  { %v649_v5 = vmul.f32 %v1476_v2, %v647_v4 }
 0x9ad   :  { %651 = vrot.lane.b32.xlu1 %v649_v5, %s1507_s5 }
 0xa1f   :  { %v652_v8 = vpop.permute.xlu1 %651 }
 0xa20   :  { %v654_v9 = vadd.f32 %v652_v8, %v644_v6 }
 0xa22   :  { %1477 = vtanh.f32 %v654_v9 }
 0xa2c   :  { %v1478_v10 = vpop.eup %1477 }
 0xa2d   :  { %657 = vrot.lane.b32.xlu0 %v1478_v10, %s1506_s19 }
 0xa9f   :  { %v658_v11 = vpop.permute.xlu0 %657 }
 0xaa0   :  { %v660_v13 = vmul.f32 %v1476_v2, %v658_v11 }
 0xaa2   :  { %662 = vrot.lane.b32.xlu1 %v660_v13, %s1507_s5 }
 0xb14   :  { %v663_v14 = vpop.permute.xlu1 %662 }
 0xb15   :  { %665 = vst.msk [vmem:[#allocation2 + $0x18] sm:$0xff] %vm253_vm3, %v663_v14  ;;  %1311 = vmatmul.mubr.msk.f32.vlgmr.msra.gmra.mrb[8].mxu0 %vm253_vm3, %v663_v14 }
 0xb16   :  { %1408 = vmatpush3.bf16.msra.mxu0 %v1585_v12  ;;  %1321 = vmatprep.mubr.msk.f32.mxu0 %vm1504_vm0, %v1505_v3 }
 0xb17   :  { %1409 = vmatprep.subr.bf16.mxu0 %v1503_v0 }
 0xb1a   :  { %1411 = vmatpush3.bf16.msra.mxu0 %v1611_v20 }
 0xb1b   :  { %1412 = vmatprep.subr.bf16.mxu0 %v1503_v0 }
 0xb1c   :  { %v978_v15 = vld [vmem:[#allocation2 + $0x18] sm:$0xff] }
 0xb1d   :  { %1353 = vmatmul.mubr.msk.f32.gmra.mrb[18].mxu1 %vm253_vm3, %v978_v15 }
 0xb1e   :  { %1355 = vmatprep.mubr.msk.f32.mxu1 %vm1504_vm0, %v1505_v3 }
 0xbe8   :  { %v735_v17 = vpop.f32.mrb[8].mxu0 }
 0xbe9   :  { %v739_v18 = vadd.f32 %v735_v17, %v666_v16  ;;  %v1312_v19 = vpop.f32.mrb[9].mxu0 }
 0xbeb   :  { %1479 = vtanh.f32 %v739_v18  ;;  %v1143_v25 = vmul.f32 -1.442695, %v739_v18 }
 0xbed   :  { %1481 = vpow2.f32 %v1143_v25 }
 0xbf0   :  { %v1095_v21 = vpop.f32.mrb[18].mxu1 }
 0xbf1   :  { %v1096_v22 = vadd.f32 %v1710_v7, %v1095_v21  ;;  %v1354_v23 = vpop.f32.mrb[19].mxu1 }
 0xbf3   :  { %1118 = vst.msk [vmem:[%s1839_s8 + $0x18] sm:$0xff] %vm1114_vm4, %v1096_v22 }
 0xbf5   :  { %v1480_v24 = vpop.eup %1479 }
 0xbf6   :  { %749 = vrot.lane.b32.xlu0 %v1480_v24, %s1506_s19 }
 0xbf7   :  { %v1482_v26 = vpop.eup %1481 }
 0xbf8   :  { %v743_v32 = vadd.f32 1.0, %v1482_v26 }
 0xbfa   :  { %1483 = vrcp.f32 %v743_v32 }
 0xc04   :  { %v1484_v27 = vpop.eup %1483 }
 0xc05   :  { %v747_v33 = vmul.f32 %v1484_v27, %v654_v9 }
 0xc68   :  { %v750_v29 = vpop.permute.xlu0 %749 }
 0xc69   :  { %v752_v31 = vmul.f32 %v1484_v27, %v750_v29 }
 0xc6b   :  { %754 = vrot.lane.b32.xlu1 %v752_v31, %s1507_s5 }
 0xcdd   :  { %v755_v34 = vpop.permute.xlu1 %754 }
 0xcde   :  { %v757_v35 = vadd.f32 %v755_v34, %v747_v33 }
 0xce0   :  { %1485 = vtanh.f32 %v757_v35 }
 0xcea   :  { %v1486_v37 = vpop.eup %1485 }
 0xceb   :  { %760 = vrot.lane.b32.xlu0 %v1486_v37, %s1506_s19 }
 0xd5d   :  { %v761_v39 = vpop.permute.xlu0 %760 }
 0xd5e   :  { %v763_v40 = vmul.f32 %v1484_v27, %v761_v39 }
 0xd60   :  { %765 = vrot.lane.b32.xlu1 %v763_v40, %s1507_s5 }
 0xdd2   :  { %v766_v41 = vpop.permute.xlu1 %765 }
 0xdd3   :  { %768 = vst.msk [vmem:[#allocation2 + $0x20] sm:$0xff] %vm253_vm3, %v766_v41  ;;  %1322 = vmatmul.mubr.msk.f32.vlgmr.msra.gmra.mrb[10].mxu0 %vm253_vm3, %v766_v41 }
 0xdd4   :  { %1414 = vmatpush3.bf16.msra.mxu0 %v1585_v12  ;;  %1332 = vmatprep.mubr.msk.f32.mxu0 %vm1504_vm0, %v1505_v3 }
 0xdd5   :  { %1415 = vmatprep.subr.bf16.mxu0 %v1503_v0 }
 0xdd8   :  { %1417 = vmatpush3.bf16.msra.mxu0 %v1611_v20 }
 0xdda   :  { %v979_v43 = vld [vmem:[#allocation2 + $0x20] sm:$0xff] }
 0xddb   :  { %1356 = vmatmul.mubr.msk.f32.gmra.mrb[20].mxu1 %vm253_vm3, %v979_v43 }
 0xddc   :  { %1358 = vmatprep.mubr.msk.f32.mxu1 %vm1504_vm0, %v1505_v3 }
 0xea6   :  { %v838_v44 = vpop.f32.mrb[10].mxu0 }
 0xea7   :  { %v842_v45 = vadd.f32 %v838_v44, %v769_v28  ;;  %v1323_v46 = vpop.f32.mrb[11].mxu0 }
 0xea9   :  { %1487 = vtanh.f32 %v842_v45  ;;  %v1145_v20 = vmul.f32 -1.442695, %v842_v45 }
 0xeab   :  { %1489 = vpow2.f32 %v1145_v20 }
 0xeae   :  { %v1100_v12 = vpop.f32.mrb[20].mxu1 }
 0xeaf   :  { %v1101_v47 = vadd.f32 %v1710_v7, %v1100_v12  ;;  %v1357_v48 = vpop.f32.mrb[21].mxu1 }
 0xeb1   :  { %1119 = vst.msk [vmem:[%s1839_s8 + $0x20] sm:$0xff] %vm1114_vm4, %v1101_v47 }
 0xeb3   :  { %v1488_v0 = vpop.eup %1487 }
 0xeb4   :  { %852 = vrot.lane.b32.xlu0 %v1488_v0, %s1506_s19 }
 0xeb5   :  { %v1490_v49 = vpop.eup %1489 }
 0xeb6   :  { %v846_v36 = vadd.f32 1.0, %v1490_v49 }
 0xeb8   :  { %1491 = vrcp.f32 %v846_v36 }
 0xec2   :  { %v1492_v50 = vpop.eup %1491 }
 0xec3   :  { %v850_v53 = vmul.f32 %v1492_v50, %v757_v35 }
 0xf26   :  { %v853_v51 = vpop.permute.xlu0 %852 }
 0xf27   :  { %v855_v52 = vmul.f32 %v1492_v50, %v853_v51 }
 0xf29   :  { %857 = vrot.lane.b32.xlu1 %v855_v52, %s1507_s5 }
 0xf9b   :  { %v858_v54 = vpop.permute.xlu1 %857 }
 0xf9c   :  { %v860_v55 = vadd.f32 %v858_v54, %v850_v53 }
 0xf9e   :  { %1493 = vtanh.f32 %v860_v55 }
 0xfa8   :  { %v1494_v56 = vpop.eup %1493 }
 0xfa9   :  { %863 = vrot.lane.b32.xlu0 %v1494_v56, %s1506_s19 }
0x101b   :  { %v864_v57 = vpop.permute.xlu0 %863 }
0x101c   :  { %v866_v58 = vmul.f32 %v1492_v50, %v864_v57 }
0x101e   :  { %868 = vrot.lane.b32.xlu1 %v866_v58, %s1507_s5 }
0x1090   :  { %v869_v59 = vpop.permute.xlu1 %868 }
0x1091   :  { %871 = vst.msk [vmem:[#allocation2 + $0x28] sm:$0xff] %vm253_vm3, %v869_v59  ;;  %1333 = vmatmul.mubr.msk.f32.vlgmr.msra.gmra.mrb[12].mxu0 %vm253_vm3, %v869_v59 }
0x1098   :  { %v980_v60 = vld [vmem:[#allocation2 + $0x28] sm:$0xff] }
0x1099   :  { %1359 = vmatmul.mubr.msk.f32.gmra.mrb[22].mxu1 %vm253_vm3, %v980_v60 }
0x109a   :  { %1361 = vmatprep.mubr.msk.f32.mxu1 %vm1504_vm0, %v1505_v3 }
0x1164   :  { %v941_v62 = vpop.f32.mrb[12].mxu0 }
0x1165   :  { %v945_v63 = vadd.f32 %v941_v62, %v872_v61  ;;  %v1334_v1 = vpop.f32.mrb[13].mxu0 }
0x1167   :  { %1495 = vtanh.f32 %v945_v63  ;;  %v1147_v3 = vmul.f32 -1.442695, %v945_v63 }
0x1169   :  { %1497 = vpow2.f32 %v1147_v3 }
0x116c   :  { %v1105_v30 = vpop.f32.mrb[22].mxu1 }
0x116d   :  { %v1106_v2 = vadd.f32 %v1710_v7, %v1105_v30  ;;  %v1360_v4 = vpop.f32.mrb[23].mxu1 }
0x116f   :  { %1120 = vst.msk [vmem:[%s1839_s8 + $0x28] sm:$0xff] %vm1114_vm4, %v1106_v2 }
0x1171   :  { %v1496_v5 = vpop.eup %1495 }
0x1172   :  { %955 = vrot.lane.b32.xlu0 %v1496_v5, %s1506_s19 }
0x1173   :  { %v1498_v6 = vpop.eup %1497 }
0x1174   :  { %v949_v38 = vadd.f32 1.0, %v1498_v6 }
0x1176   :  { %1499 = vrcp.f32 %v949_v38 }
0x1180   :  { %v1500_v42 = vpop.eup %1499 }
0x1181   :  { %v953_v10 = vmul.f32 %v1500_v42, %v860_v55 }
0x11e4   :  { %v956_v8 = vpop.permute.xlu0 %955 }
0x11e5   :  { %v958_v9 = vmul.f32 %v1500_v42, %v956_v8 }
0x11e7   :  { %960 = vrot.lane.b32.xlu1 %v958_v9, %s1507_s5 }
0x1259   :  { %v961_v11 = vpop.permute.xlu1 %960 }
0x125a   :  { %v963_v13 = vadd.f32 %v961_v11, %v953_v10 }
0x125c   :  { %1501 = vtanh.f32 %v963_v13 }
0x1266   :  { %v1502_v14 = vpop.eup %1501 }
0x1267   :  { %966 = vrot.lane.b32.xlu0 %v1502_v14, %s1506_s19 }
0x12d9   :  { %v967_v15 = vpop.permute.xlu0 %966 }
0x12da   :  { %v969_v16 = vmul.f32 %v1500_v42, %v967_v15 }
0x12dc   :  { %971 = vrot.lane.b32.xlu1 %v969_v16, %s1507_s5 }
0x134e   :  { %v972_v17 = vpop.permute.xlu1 %971 }
0x134f   :  { %974 = vst.msk [vmem:[#allocation2 + $0x30] sm:$0xff] %vm253_vm3, %v972_v17 }
0x1356   :  { %v981_v18 = vld [vmem:[#allocation2 + $0x30] sm:$0xff] }
0x1357   :  { %1362 = vmatmul.mubr.msk.f32.gmra.mrb[24].mxu1 %vm253_vm3, %v981_v18 }
0x142a   :  { %v1110_v19 = vpop.f32.mrb[24].mxu1 }
0x142b   :  { %v1111_v21 = vadd.f32 %v1710_v7, %v1110_v19  ;;  %v1363_v22 = vpop.f32.mrb[25].mxu1 }
0x142d   :  { %1121 = vst.msk [vmem:[%s1839_s8 + $0x30] sm:$0xff] %vm1114_vm4, %v1111_v21 }

</bundles_post_ra>
